<compile_context>
chip_gen: v5e
topology: v5e:2x2
jax: 0.10.0
libtpu: 0.0.40
codegen_flags: <defaults>
</compile_context>

<pallas_src>
import jax
import jax.numpy as jnp
from jax.experimental import pallas as pl
from jax.experimental.pallas import tpu as pltpu


def _dropout3d_kernel(f_ref, x_ref, o_ref):
    # f_ref: (CH_BLOCK, 1) float32 per-channel factor
    #        (0.0 for dropped channels, 1/(1-p) for kept channels).
    # x_ref / o_ref: (CH_BLOCK, TILE_S) lane-dense slab in the input dtype.
    # Multiply promotes to f32 (exact scaling), store casts back.
    o_ref[...] = (x_ref[...] * f_ref[...]).astype(o_ref.dtype)


def _choose_tiles(nc, s, itemsize, block_budget_bytes=(4 << 20)):
    """Pick (CH_BLOCK, TILE_S) satisfying TPU (sublane, 128) tiling rules.

    TILE_S: multiple of 128 (masked edge block if s % 128 != 0) or the full
            spatial extent when s <= 128.  Capped so a single row stays small
            enough to let CH_BLOCK amortize per-step overhead.
    CH_BLOCK: multiple of the sublane count, or the full channel extent.
    """
    sub = max(8, 32 // itemsize)          # sublane multiple: 8 f32, 16 bf16, 32 i8
    LANE = 128
    max_tile_s = 32 * 1024                # cap lanes per block (128 KiB/row f32)

    if s <= LANE:
        tile_s = s                        # full extent: always legal
    elif s % LANE == 0:
        tile_s = min(s, max_tile_s)
        tile_s -= tile_s % LANE
    else:
        # 128-multiple tile; the last lane block is masked by Pallas.
        tile_s = min((s // LANE) * LANE, max_tile_s)

    if nc <= sub:
        ch = nc                           # full extent on the channel axis
    else:
        rows = max(sub, block_budget_bytes // max(1, tile_s * itemsize))
        if rows >= nc:
            ch = nc                       # full extent: legal even if not %8
        else:
            ch = max(sub, rows - rows % sub)
    return ch, tile_s


def dropout3d(x, key, p, training=True, donate_x=False):
    """Channel-wise (nn.Dropout3d) dropout.

    x:   (N, C, D, H, W) or unbatched (C, D, H, W)
    key: jax PRNG key
    p:   drop probability
    donate_x: alias the input buffer to the output (in-place style use).
    """
    if not training or p <= 0.0:
        return x
    if p >= 1.0:
        return jnp.zeros_like(x)

    orig_shape = x.shape
    if x.ndim == 5:
        n, c = x.shape[:2]
        spatial = x.shape[2:]
    elif x.ndim == 4:                     # unbatched (C, D, H, W)
        n, c = 1, x.shape[0]
        spatial = x.shape[1:]
    else:
        raise ValueError(f"dropout3d expects 4-D or 5-D input, got {x.ndim}-D")

    nc = n * c
    s = 1
    for d in spatial:
        s *= d

    scale = 1.0 / (1.0 - p)
    keep = jax.random.bernoulli(key, 1.0 - p, (nc,))
    # Keep the factor in float32 so the scale is exact (kernel is HBM-bound,
    # the f32 multiply is free).
    factor = (keep.astype(jnp.float32) * scale).reshape(nc, 1)

    x_flat = x.reshape(nc, s)
    itemsize = jnp.dtype(x.dtype).itemsize
    ch_block, tile_s = _choose_tiles(nc, s, itemsize)
    grid = (pl.cdiv(nc, ch_block), pl.cdiv(s, tile_s))

    # Explicit VMEM budget: double-buffered input + output blocks plus slack.
    # Covers v5e's 16 MiB default scoped limit, stays well inside v7x's
    # 64 MiB physical VMEM.
    block_bytes = ch_block * tile_s * itemsize
    vmem_limit = min(48 << 20, max(24 << 20, 4 * block_bytes + (4 << 20)))

    cost = pl.CostEstimate(
        flops=nc * s,
        transcendentals=0,
        bytes_accessed=2 * nc * s * itemsize + nc * 4,
    )

    call_kwargs = {}
    if donate_x:
        # inputs are (factor, x_flat); alias x_flat -> output.
        call_kwargs["input_output_aliases"] = {1: 0}

    # Invariant: spatial axis is the INNER grid dim and the factor index_map
    # is (i, 0) so the factor tile stays resident across spatial blocks.
    out_flat = pl.pallas_call(
        _dropout3d_kernel,
        out_shape=jax.ShapeDtypeStruct((nc, s), x.dtype),
        grid_spec=pltpu.PrefetchScalarGridSpec(
            num_scalar_prefetch=0,
            grid=grid,
            in_specs=[
                pl.BlockSpec((ch_block, 1), lambda i, j: (i, 0)),       # factor
                pl.BlockSpec((ch_block, tile_s), lambda i, j: (i, j)),  # x
            ],
            out_specs=pl.BlockSpec((ch_block, tile_s), lambda i, j: (i, j)),
        ),
        compiler_params=pltpu.CompilerParams(
            dimension_semantics=("parallel", "parallel"),
            vmem_limit_bytes=vmem_limit,
        ),
        cost_estimate=cost,
        **call_kwargs,
    )(factor, x_flat)

    return out_flat.reshape(orig_shape)


def _reference(x, key, p):
    """Pure-JAX reference with the same channel-drop semantics."""
    if x.ndim == 5:
        n, c = x.shape[:2]
        bshape = (n, c) + (1,) * (x.ndim - 2)
        nc = n * c
    else:
        c = x.shape[0]
        bshape = (c,) + (1,) * (x.ndim - 1)
        nc = c
    keep = jax.random.bernoulli(key, 1.0 - p, (nc,)).astype(jnp.float32)
    return (x * keep.reshape(bshape) * (1.0 / (1.0 - p))).astype(x.dtype)


if __name__ == "__main__":
    key = jax.random.PRNGKey(0)
    k_x1, k_m1, k_x2, k_m2 = jax.random.split(key, 4)
    p = 0.5

    # Test 1: small aligned 5-D input (N, C, D, H, W).
    N, C, D, H, W = 2, 4, 4, 8, 8
    x1 = jax.random.normal(k_x1, (N, C, D, H, W), dtype=jnp.float32)
    out1 = jax.block_until_ready(dropout3d(x1, k_m1, p))
    ref1 = _reference(x1, k_m1, p)
    assert out1.shape == x1.shape and out1.dtype == x1.dtype
    assert jnp.allclose(out1, ref1, atol=1e-6), "mismatch vs reference (aligned)"

    # Test 2: non-divisible shapes (nc % 8 != 0, spatial % 128 != 0) to
    # exercise masked edge blocks / full-extent tiling paths.
    x2 = jax.random.normal(k_x2, (3, 5, 3, 5, 7), dtype=jnp.float32)
    out2 = jax.block_until_ready(dropout3d(x2, k_m2, p))
    ref2 = _reference(x2, k_m2, p)
    assert out2.shape == x2.shape and out2.dtype == x2.dtype
    assert jnp.allclose(out2, ref2, atol=1e-6), "mismatch vs reference (ragged)"

    # Eval mode / degenerate probabilities.
    assert jnp.array_equal(dropout3d(x1, k_m1, p, training=False), x1)
    assert jnp.array_equal(dropout3d(x1, k_m1, 1.0), jnp.zeros_like(x1))

    print("KERNEL_OK")
</pallas_src>

<mosaic_0001>
module attributes {stable_mosaic.version = 11 : i64} {
  func.func @_dropout3d_kernel(%arg0: i32, %arg1: i32, %arg2: memref<8x1xf32, #tpu.memory_space<vmem>>, %arg3: memref<8x256xf32, #tpu.memory_space<vmem>>, %arg4: memref<8x256xf32, #tpu.memory_space<vmem>>) attributes {dimension_semantics = [#tpu.dimension_semantics<parallel>, #tpu.dimension_semantics<parallel>], iteration_bounds = array<i64: 1, 1>, scalar_prefetch = 0 : i64, scratch_operands = 0 : i64, tpu.core_type = #tpu.core_type<tc>, window_params = [{transform_indices = @transform_0, window_bounds = array<i64: 8, 1>}, {transform_indices = @transform_1, window_bounds = array<i64: 8, 256>}, {transform_indices = @transform_2, window_bounds = array<i64: 8, 256>}]} {
    %c0 = arith.constant 0 : index
    %c0_0 = arith.constant 0 : index
    %0 = vector.load %arg3[%c0, %c0_0] : memref<8x256xf32, #tpu.memory_space<vmem>>, vector<8x256xf32>
    %c0_1 = arith.constant 0 : index
    %c0_2 = arith.constant 0 : index
    %1 = vector.load %arg2[%c0_1, %c0_2] : memref<8x1xf32, #tpu.memory_space<vmem>>, vector<8x1xf32>
    %2 = vector.broadcast %1 : vector<8x1xf32> to vector<8x256xf32>
    %3 = arith.mulf %0, %2 : vector<8x256xf32>
    %c0_3 = arith.constant 0 : index
    %c0_4 = arith.constant 0 : index
    %4 = vector.load %arg4[%c0_3, %c0_4] : memref<8x256xf32, #tpu.memory_space<vmem>>, vector<8x256xf32>
    tpu.vector_store %arg4[%c0_3, %c0_4], %3 {strides = array<i32>} : memref<8x256xf32, #tpu.memory_space<vmem>>, vector<8x256xf32>,
    return
  }
  func.func @transform_0(%arg0: i32, %arg1: i32) -> (i32, i32) {
    %c0_i32 = arith.constant 0 : i32
    %c0_i32_0 = arith.constant 0 : i32
    return %arg0, %c0_i32 : i32, i32
  }
  func.func @transform_1(%arg0: i32, %arg1: i32) -> (i32, i32) {
    %c0_i32 = arith.constant 0 : i32
    return %arg0, %arg1 : i32, i32
  }
  func.func @transform_2(%arg0: i32, %arg1: i32) -> (i32, i32) {
    %c0_i32 = arith.constant 0 : i32
    return %arg0, %arg1 : i32, i32
  }
}

</mosaic_0001>

<bundles_post_ra>
// kernel: tpu_custom_call.1
= control target key start
LH: loop header
LB: loop body
LE: loop exit
PB: predicated region body
PF: predicated region fallthrough
CT: control target
= control target key end

     0   :  { %7 = vsyncpa [#allocation3], 0  ;;  %s138_s0 = inlined_call_operand.vmem [shape: f32[8,1], index: 0, kind: input, shape index: {}]   ;;  %s139_s1 = inlined_call_operand.hbm [shape: f32[8,256], index: 1, kind: input, shape index: {}]   ;;  %s140_s2 = inlined_call_operand.hbm [shape: f32[8,256], index: 2, kind: output, shape index: {}]  }
   0x1   :  { %8 = vsyncpa [#allocation4], 0  ;;  %s16_s11 = sshll.u32 %s139_s1, 4  ;;  %s111_s12 = smov [#allocation2]   ;;  %s17_s11 = int_to_ptr.hbm [resolvable:$true] %s16_s11 }
   0x2   :  { %s18_s13 = sshll.u32 %s111_s12, 4  ;;  %s19_s13 = int_to_ptr.vmem [resolvable:$true] %s18_s13 }
   0x3   :  { %21 = dma.hbm_to_vmem [thread:$0]  %s17_s11, 256, %s19_s13, [#allocation3]  }
   0x4   :  { %107 = dma.done.wait [#allocation3], 256  }
   0x5   :  { %108 = vsyncadd [#allocation3], 4294967040  ;;  %v112_v0 = vmov 0   ;;  %v28_v1 = vld [vmem:[%s138_s0] sm:$0xff]  ;;  %v27_v3 = vld [vmem:[#allocation2 + $0x8] sm:$0xff]  ;;  %s113_s16 = smov [#allocation5]  }
   0x6   :  { %58 = vset.pattern.permute.xlu0 %v112_v0  ;;  %v26_v2 = vld [vmem:[#allocation2] sm:$0xff]  ;;  %s43_s17 = sshll.u32 %s113_s16, 4  ;;  %s45_s19 = sshll.u32 %s140_s2, 4  ;;  %s44_s17 = int_to_ptr.vmem [resolvable:$true] %s43_s17  ;;  %s46_s19 = int_to_ptr.hbm [resolvable:$true] %s45_s19 }
   0x7   :  { %31 = vperm.xlu0 %58, %v28_v1  }
  0x79   :  { %v32_v4 = vpop.permute.xlu0 %31 }
  0x7a   :  { %v34_v5 = vmul.f32 %v32_v4, %v26_v2  ;;  %v35_v6 = vmul.f32 %v32_v4, %v27_v3 }
  0x7c   :  { %36 = vst [vmem:[#allocation5] sm:$0xff] %v34_v5 }
  0x7d   :  { %37 = vst [vmem:[#allocation5 + $0x8] sm:$0xff] %v35_v6 }
  0x7e   :  { %48 = dma.vmem_to_hbm [thread:$0]  %s44_s17, 256, %s46_s19, [#allocation4]  }
  0x7f   :  { %109 = dma.done.wait [#allocation4], 256  }
  0x80   :  { %110 = vsyncadd [#allocation4], 4294967040 }
  0x81   :  { %53 = vsyncpa [#allocation3], 1 }
  0x82   :  { %54 = vsyncpa [#allocation4], 1 }

</bundles_post_ra>
